<compile_context>
chip_gen: v6e
topology: v6e:2x2x1
jax: 0.10.0
libtpu: 0.0.40
codegen_flags: <defaults>
</compile_context>

<pallas_src>
import functools
import math

import jax
import jax.numpy as jnp
from jax.experimental import pallas as pl
from jax.experimental.pallas import tpu as pltpu

# NOTE: the reference module hard-codes 1/sqrt(2048) regardless of the actual
# feature size F; we keep that behavior faithfully.
SCALE = 1.0 / math.sqrt(2048.0)

_MASK_VALUE = -1e30  # large-negative (finite) mask for padded key columns


def _attend_and_store(q, k, v, o_ref, *, approx_recip, n_valid):
    """q, k, v: (bt, n, f) in compute dtype. Writes softmax(q k^T * SCALE) @ v."""
    n = q.shape[1]
    # Scores as a contraction over the feature axis of both operands
    # (no explicit k transpose / VMEM temp).
    s = jnp.einsum("bnd,bmd->bnm", q, k,
                   preferred_element_type=jnp.float32) * SCALE      # (bt,n,n) f32
    if n_valid < n:
        # Padded key columns must not receive softmax mass.
        key_idx = jax.lax.broadcasted_iota(jnp.int32, (1, 1, n), 2)
        s = jnp.where(key_idx < n_valid, s, _MASK_VALUE)

    # Numerically-stable f32 softmax along the key axis.
    m = jnp.max(s, axis=-1, keepdims=True)
    p = jnp.exp(s - m)
    denom = jnp.sum(p, axis=-1, keepdims=True)
    w = p * pl.reciprocal(denom, approx=approx_recip)

    out = jnp.einsum("bnm,bmd->bnd", w.astype(v.dtype), v,
                     preferred_element_type=jnp.float32)            # (bt,n,f) f32
    o_ref[...] = out.astype(o_ref.dtype)


def _sa_fused_kernel(x_ref, w_ref, b_ref, o_ref, *,
                     compute_dtype, approx_recip, n_valid):
    """Whole fused (F, 3F) weight resident; one grid axis over batch tiles."""
    bt, n, f = x_ref.shape
    x2d = x_ref[...].reshape(bt * n, f).astype(compute_dtype)
    qkv = jnp.dot(x2d, w_ref[...],
                  preferred_element_type=jnp.float32) + b_ref[...]  # (bt*n, 3F) f32
    q = qkv[:, 0 * f:1 * f].reshape(bt, n, f).astype(compute_dtype)
    k = qkv[:, 1 * f:2 * f].reshape(bt, n, f).astype(compute_dtype)
    v = qkv[:, 2 * f:3 * f].reshape(bt, n, f).astype(compute_dtype)
    _attend_and_store(q, k, v, o_ref, approx_recip=approx_recip, n_valid=n_valid)


def _sa_tiled_kernel(x_ref, w_ref, b_ref, o_ref, qkv_ref, *,
                     compute_dtype, approx_recip, n_valid):
    """Weight tiled over the q/k/v axis; grid = (batch tiles, 3).

    Step j computes projection j (0=q, 1=k, 2=v) into the f32 VMEM scratch that
    is resident across the 'arbitrary' j axis; attention runs on the last step.
    """
    j = pl.program_id(1)
    bt, n, f = x_ref.shape
    x2d = x_ref[...].reshape(bt * n, f).astype(compute_dtype)
    qkv_ref[j] = jnp.dot(x2d, w_ref[...],
                         preferred_element_type=jnp.float32) + b_ref[...]

    @pl.when(j == pl.num_programs(1) - 1)
    def _():
        q = qkv_ref[0].reshape(bt, n, f).astype(compute_dtype)
        k = qkv_ref[1].reshape(bt, n, f).astype(compute_dtype)
        v = qkv_ref[2].reshape(bt, n, f).astype(compute_dtype)
        _attend_and_store(q, k, v, o_ref, approx_recip=approx_recip, n_valid=n_valid)


def _vmem_capacity_bytes():
    """Per-core VMEM capacity; conservative 64 MiB (v7x) if the query fails."""
    try:
        info = pltpu.get_tpu_info()
        for attr in ("vmem_capacity_bytes", "vmem_bytes"):
            cap = getattr(info, attr, None)
            if cap:
                return int(cap)
    except Exception:
        pass
    return 64 * 1024 * 1024


def self_attention(feats, wq, bq, wk, bk, wv, bv, *,
                   compute_dtype=jnp.bfloat16, approx_recip=True,
                   block_b=None, rows_target=None, num_f_tiles=None):
    """feats: (B, N, F); weights: (F, F) PyTorch nn.Linear layout; biases: (F,)."""
    B, N, F = feats.shape
    out_dtype = feats.dtype
    f3 = 3 * F

    c_sz = jnp.dtype(compute_dtype).itemsize
    x_sz = jnp.dtype(feats.dtype).itemsize
    o_sz = jnp.dtype(out_dtype).itemsize

    # --- chip-aware VMEM budget (v7x: 64 MiB/TC; v5e/v6e: 128 MiB) -----------
    vmem_cap = _vmem_capacity_bytes()
    vmem_ceiling = int(max(min(vmem_cap - (8 << 20), 100 << 20), 16 << 20))

    # --- keep the fused weight resident, or tile it per projection? ----------
    if num_f_tiles is None:
        w_full_bytes = F * f3 * c_sz
        num_f_tiles = 3 if (w_full_bytes > vmem_ceiling // 3 and F % 128 == 0) else 1
    assert num_f_tiles in (1, 3)

    # --- pad N up to a sublane multiple so in-kernel reshapes are free -------
    n_pad = -(-N // 8) * 8
    x = feats if n_pad == N else jnp.pad(feats, ((0, 0), (0, n_pad - N), (0, 0)))

    # --- batch tiling: fill the MXU M dim, keep >= 2 grid steps for 2 TCs ----
    if rows_target is None:
        # Bigger slabs on 128 MiB chips (v5e/v6e); stay smaller on v7x (64 MiB).
        rows_target = 512 if vmem_cap >= (100 << 20) else 256
    if block_b is None:
        block_b = 1
        max_bb = B if B < 2 else B // 2          # leave >= 2 steps for megacore
        for cand in range(1, max_bb + 1):
            if B % cand == 0 and cand * n_pad <= max(rows_target, n_pad):
                block_b = cand
    grid_b = B // block_b
    rows = block_b * n_pad

    # --- host-side weight prep (layout plumbing, reused across calls) --------
    w_fused = jnp.concatenate([wq.T, wk.T, wv.T], axis=1).astype(compute_dtype)  # (F, 3F)
    b_fused = jnp.concatenate([bq, bk, bv]).reshape(1, f3).astype(jnp.float32)

    # --- VMEM footprint estimate (incl. in-kernel casts and f32 temps) -------
    t3f = f3 // num_f_tiles
    w_bufs = 1 if num_f_tiles == 1 else 2
    est = (2 * rows * F * x_sz                 # x tiles (double-buffered, input dtype)
           + rows * F * c_sz                   # in-kernel x cast
           + w_bufs * F * t3f * c_sz           # fused-weight tile(s)
           + w_bufs * t3f * 4                  # bias tile(s)
           + rows * f3 * 4                     # qkv f32 (scratch / temps)
           + 3 * rows * F * c_sz               # q/k/v compute-dtype casts
           + 3 * block_b * n_pad * n_pad * 4   # scores / exp / softmax weights (f32)
           + block_b * n_pad * n_pad * c_sz    # softmax-weight cast
           + rows * F * 4                      # attended f32 temp
           + 2 * rows * F * o_sz)              # output tiles (double-buffered)
    vmem_limit = int(min(max(2 * est, 32 << 20), vmem_ceiling))

    def _run(single_buffer_weights):
        if num_f_tiles == 1:
            w_kw = {"pipeline_mode": pl.Buffered(1)} if single_buffer_weights else {}
            grid = (grid_b,)
            in_specs = [
                pl.BlockSpec((block_b, n_pad, F), lambda i: (i, 0, 0)),
                pl.BlockSpec((F, f3), lambda i: (0, 0), **w_kw),
                pl.BlockSpec((1, f3), lambda i: (0, 0), **w_kw),
            ]
            out_specs = pl.BlockSpec((block_b, n_pad, F), lambda i: (i, 0, 0))
            scratch_shapes = []
            dim_sem = ("parallel",)
            kernel = functools.partial(_sa_fused_kernel, compute_dtype=compute_dtype,
                                       approx_recip=approx_recip, n_valid=N)
        else:
            grid = (grid_b, 3)
            in_specs = [
                pl.BlockSpec((block_b, n_pad, F), lambda i, j: (i, 0, 0)),
                pl.BlockSpec((F, F), lambda i, j: (0, j)),   # one projection per j step
                pl.BlockSpec((1, F), lambda i, j: (0, j)),
            ]
            out_specs = pl.BlockSpec((block_b, n_pad, F), lambda i, j: (i, 0, 0))
            scratch_shapes = [pltpu.VMEM((3, rows, F), jnp.float32)]
            dim_sem = ("parallel", "arbitrary")
            kernel = functools.partial(_sa_tiled_kernel, compute_dtype=compute_dtype,
                                       approx_recip=approx_recip, n_valid=N)

        return pl.pallas_call(
            kernel,
            out_shape=jax.ShapeDtypeStruct((B, n_pad, F), out_dtype),
            grid_spec=pltpu.PrefetchScalarGridSpec(
                num_scalar_prefetch=0,
                grid=grid,
                in_specs=in_specs,
                out_specs=out_specs,
                scratch_shapes=scratch_shapes,
            ),
            compiler_params=pltpu.CompilerParams(
                dimension_semantics=dim_sem,
                vmem_limit_bytes=vmem_limit,
            ),
        )(x, w_fused, b_fused)

    if num_f_tiles == 1:
        try:
            out = _run(True)
        except Exception:
            # TODO(synk): fall back to default double-buffering if this jax build
            # rejects single-buffered (pl.Buffered(1)) grid-invariant operands.
            out = _run(False)
    else:
        out = _run(False)

    return out if n_pad == N else out[:, :N, :]


def _init_linear(key, feats_size):
    """Deterministic init matching nn.Linear default: U(-1/sqrt(in), 1/sqrt(in))."""
    kw, kb = jax.random.split(key)
    bound = 1.0 / math.sqrt(feats_size)
    w = jax.random.uniform(kw, (feats_size, feats_size),
                           minval=-bound, maxval=bound, dtype=jnp.float32)
    b = jax.random.uniform(kb, (feats_size,),
                           minval=-bound, maxval=bound, dtype=jnp.float32)
    return w, b


def reference(feats, wq, bq, wk, bk, wv, bv):
    q = feats @ wq.T + bq
    k = feats @ wk.T + bk
    v = feats @ wv.T + bv
    dot = jnp.einsum("bnd,bmd->bnm", q, k) * SCALE
    w = jax.nn.softmax(dot, axis=-1)
    return jnp.einsum("bnm,bmd->bnd", w, v)


if __name__ == "__main__":
    # --- case 1: fused-weight path, B=2, N=8, F=32 ----------------------------
    B, N, F = 2, 8, 32
    kx, kq, kk, kv = jax.random.split(jax.random.PRNGKey(0), 4)
    feats = jax.random.normal(kx, (B, N, F), dtype=jnp.float32)
    wq, bq = _init_linear(kq, F)
    wk, bk = _init_linear(kk, F)
    wv, bv = _init_linear(kv, F)
    ref = reference(feats, wq, bq, wk, bk, wv, bv)

    # Exact path (f32 MXU inputs, exact reciprocal): tight correctness check.
    out_f32 = jax.block_until_ready(
        self_attention(feats, wq, bq, wk, bk, wv, bv,
                       compute_dtype=jnp.float32, approx_recip=False))
    assert out_f32.shape == (B, N, F)
    assert jnp.allclose(out_f32, ref, atol=1e-5, rtol=1e-5), "f32 fused mismatch"

    # Production path (bf16 MXU inputs, f32 accumulation, EUP approx reciprocal).
    out_bf16 = jax.block_until_ready(
        self_attention(feats, wq, bq, wk, bk, wv, bv,
                       compute_dtype=jnp.bfloat16, approx_recip=True))
    assert out_bf16.shape == (B, N, F)
    assert jnp.allclose(out_bf16, ref, atol=5e-2, rtol=5e-2), "bf16 fused mismatch"

    # --- case 2: tiled-weight path (forced) — exercises the 2nd grid axis -----
    B2, N2, F2 = 2, 8, 128
    k2 = jax.random.split(jax.random.PRNGKey(1), 4)
    feats2 = jax.random.normal(k2[0], (B2, N2, F2), dtype=jnp.float32)
    wq2, bq2 = _init_linear(k2[1], F2)
    wk2, bk2 = _init_linear(k2[2], F2)
    wv2, bv2 = _init_linear(k2[3], F2)
    ref2 = reference(feats2, wq2, bq2, wk2, bk2, wv2, bv2)
    out2 = jax.block_until_ready(
        self_attention(feats2, wq2, bq2, wk2, bk2, wv2, bv2,
                       compute_dtype=jnp.float32, approx_recip=False,
                       num_f_tiles=3))
    assert out2.shape == (B2, N2, F2)
    assert jnp.allclose(out2, ref2, atol=1e-4, rtol=1e-4), "tiled-weight mismatch"

    # --- case 3: N not a multiple of 8 -> host pad + in-kernel key mask -------
    B3, N3, F3 = 2, 6, 32
    k3 = jax.random.split(jax.random.PRNGKey(2), 4)
    feats3 = jax.random.normal(k3[0], (B3, N3, F3), dtype=jnp.float32)
    wq3, bq3 = _init_linear(k3[1], F3)
    wk3, bk3 = _init_linear(k3[2], F3)
    wv3, bv3 = _init_linear(k3[3], F3)
    ref3 = reference(feats3, wq3, bq3, wk3, bk3, wv3, bv3)
    out3 = jax.block_until_ready(
        self_attention(feats3, wq3, bq3, wk3, bk3, wv3, bv3,
                       compute_dtype=jnp.float32, approx_recip=False))
    assert out3.shape == (B3, N3, F3)
    assert jnp.allclose(out3, ref3, atol=1e-5, rtol=1e-5), "padded-N mismatch"

    print("KERNEL_OK")
</pallas_src>

<mosaic_0001>
module attributes {stable_mosaic.version = 11 : i64} {
  func.func @_sa_fused_kernel(%arg0: i32, %arg1: memref<1x8x32xf32, #tpu.memory_space<vmem>>, %arg2: memref<32x96xf32, #tpu.memory_space<vmem>>, %arg3: memref<1x96xf32, #tpu.memory_space<vmem>>, %arg4: memref<1x8x32xf32, #tpu.memory_space<vmem>>) attributes {dimension_semantics = [#tpu.dimension_semantics<parallel>], iteration_bounds = array<i64: 2>, scalar_prefetch = 0 : i64, scratch_operands = 0 : i64, tpu.core_type = #tpu.core_type<tc>, window_params = [{transform_indices = @transform_0, window_bounds = array<i64: 1, 8, 32>}, {pipeline_mode = #tpu.pipeline_mode<synchronous>, transform_indices = @transform_1, window_bounds = array<i64: 32, 96>}, {pipeline_mode = #tpu.pipeline_mode<synchronous>, transform_indices = @transform_2, window_bounds = array<i64: 1, 96>}, {transform_indices = @transform_3, window_bounds = array<i64: 1, 8, 32>}]} {
    %c0 = arith.constant 0 : index
    %c0_0 = arith.constant 0 : index
    %c0_1 = arith.constant 0 : index
    %0 = vector.load %arg1[%c0, %c0_0, %c0_1] : memref<1x8x32xf32, #tpu.memory_space<vmem>>, vector<1x8x32xf32>
    %1 = vector.shape_cast %0 : vector<1x8x32xf32> to vector<8x32xf32>
    %c0_2 = arith.constant 0 : index
    %c0_3 = arith.constant 0 : index
    %2 = vector.load %arg2[%c0_2, %c0_3] : memref<32x96xf32, #tpu.memory_space<vmem>>, vector<32x96xf32>
    %cst = arith.constant dense<0.000000e+00> : vector<8x96xf32>
    %3 = tpu.matmul %1, %2, %cst {dimension_numbers = #tpu.dot_dimension_numbers<[1], [0], [0], [1], [0, 0, 1, 1], [], []>} : vector<8x32xf32>, vector<32x96xf32>, vector<8x96xf32> -> vector<8x96xf32>
    %c0_4 = arith.constant 0 : index
    %c0_5 = arith.constant 0 : index
    %4 = vector.load %arg3[%c0_4, %c0_5] : memref<1x96xf32, #tpu.memory_space<vmem>>, vector<1x96xf32>
    %5 = vector.broadcast %4 : vector<1x96xf32> to vector<8x96xf32>
    %6 = arith.addf %3, %5 : vector<8x96xf32>
    %7 = vector.extract_strided_slice %6 {offsets = [0, 0], sizes = [8, 32], strides = [1, 1]} : vector<8x96xf32> to vector<8x32xf32>
    %8 = vector.shape_cast %7 : vector<8x32xf32> to vector<1x8x32xf32>
    %9 = vector.extract_strided_slice %6 {offsets = [0, 32], sizes = [8, 32], strides = [1, 1]} : vector<8x96xf32> to vector<8x32xf32>
    %10 = vector.shape_cast %9 : vector<8x32xf32> to vector<1x8x32xf32>
    %11 = vector.extract_strided_slice %6 {offsets = [0, 64], sizes = [8, 32], strides = [1, 1]} : vector<8x96xf32> to vector<8x32xf32>
    %12 = vector.shape_cast %11 : vector<8x32xf32> to vector<1x8x32xf32>
    "tpu.trace_start"() <{level = 10 : i32, message = "bnd,bmd->bnm"}> : () -> ()
    %cst_6 = arith.constant dense<0.000000e+00> : vector<1x8x8xf32>
    %13 = tpu.matmul %8, %10, %cst_6 {dimension_numbers = #tpu.dot_dimension_numbers<[2], [2], [1], [1], [0, 0, 0, 1, 1, 1], [0], [0]>} : vector<1x8x32xf32>, vector<1x8x32xf32>, vector<1x8x8xf32> -> vector<1x8x8xf32>
    "tpu.trace_stop"() : () -> ()
    %cst_7 = arith.constant 0.0220970865 : f32
    %14 = vector.broadcast %cst_7 : f32 to vector<1x8x8xf32>
    %15 = arith.mulf %13, %14 : vector<1x8x8xf32>
    %cst_8 = arith.constant dense<0xFF800000> : vector<1x8xf32>
    %16 = vector.multi_reduction <maximumf>, %15, %cst_8 [2] : vector<1x8x8xf32> to vector<1x8xf32>
    %17 = vector.shape_cast %16 : vector<1x8xf32> to vector<1x8x1xf32>
    %18 = vector.broadcast %17 : vector<1x8x1xf32> to vector<1x8x8xf32>
    %19 = arith.subf %15, %18 : vector<1x8x8xf32>
    %20 = math.exp %19 : vector<1x8x8xf32>
    %cst_9 = arith.constant dense<0.000000e+00> : vector<1x8xf32>
    %21 = vector.multi_reduction <add>, %20, %cst_9 [2] : vector<1x8x8xf32> to vector<1x8xf32>
    %22 = vector.shape_cast %21 : vector<1x8xf32> to vector<1x8x1xf32>
    %23 = tpu.reciprocal %22 : vector<1x8x1xf32> -> vector<1x8x1xf32>
    %24 = vector.broadcast %23 : vector<1x8x1xf32> to vector<1x8x8xf32>
    %25 = arith.mulf %20, %24 : vector<1x8x8xf32>
    "tpu.trace_start"() <{level = 10 : i32, message = "bnm,bmd->bnd"}> : () -> ()
    %cst_10 = arith.constant dense<0.000000e+00> : vector<1x8x32xf32>
    %26 = tpu.matmul %25, %12, %cst_10 {dimension_numbers = #tpu.dot_dimension_numbers<[2], [1], [1], [2], [0, 0, 0, 1, 1, 2], [0], [0]>} : vector<1x8x8xf32>, vector<1x8x32xf32>, vector<1x8x32xf32> -> vector<1x8x32xf32>
    "tpu.trace_stop"() : () -> ()
    %c0_11 = arith.constant 0 : index
    %c0_12 = arith.constant 0 : index
    %c0_13 = arith.constant 0 : index
    %27 = vector.load %arg4[%c0_11, %c0_12, %c0_13] : memref<1x8x32xf32, #tpu.memory_space<vmem>>, vector<1x8x32xf32>
    tpu.vector_store %arg4[%c0_11, %c0_12, %c0_13], %26 {strides = array<i32>} : memref<1x8x32xf32, #tpu.memory_space<vmem>>, vector<1x8x32xf32>,
    return
  }
  func.func @transform_0(%arg0: i32) -> (i32, i32, i32) {
    %c0_i32 = arith.constant 0 : i32
    %c0_i32_0 = arith.constant 0 : i32
    %c0_i32_1 = arith.constant 0 : i32
    return %arg0, %c0_i32, %c0_i32_0 : i32, i32, i32
  }
  func.func @transform_1(%arg0: i32) -> (i32, i32) {
    %c0_i32 = arith.constant 0 : i32
    %c0_i32_0 = arith.constant 0 : i32
    %c0_i32_1 = arith.constant 0 : i32
    return %c0_i32, %c0_i32_0 : i32, i32
  }
  func.func @transform_2(%arg0: i32) -> (i32, i32) {
    %c0_i32 = arith.constant 0 : i32
    %c0_i32_0 = arith.constant 0 : i32
    %c0_i32_1 = arith.constant 0 : i32
    return %c0_i32, %c0_i32_0 : i32, i32
  }
  func.func @transform_3(%arg0: i32) -> (i32, i32, i32) {
    %c0_i32 = arith.constant 0 : i32
    %c0_i32_0 = arith.constant 0 : i32
    %c0_i32_1 = arith.constant 0 : i32
    return %arg0, %c0_i32, %c0_i32_0 : i32, i32, i32
  }
}

module attributes {stable_mosaic.version = 11 : i64} {
  func.func @_sa_fused_kernel(%arg0: i32, %arg1: memref<1x8x32xf32, #tpu.memory_space<vmem>>, %arg2: memref<32x96xf32, #tpu.memory_space<vmem>>, %arg3: memref<1x96xf32, #tpu.memory_space<vmem>>, %arg4: memref<1x8x32xf32, #tpu.memory_space<vmem>>) attributes {dimension_semantics = [#tpu.dimension_semantics<parallel>], iteration_bounds = array<i64: 2>, scalar_prefetch = 0 : i64, scratch_operands = 0 : i64, tpu.core_type = #tpu.core_type<tc>, window_params = [{transform_indices = @transform_0, window_bounds = array<i64: 1, 8, 32>}, {pipeline_mode = #tpu.pipeline_mode<synchronous>, transform_indices = @transform_1, window_bounds = array<i64: 32, 96>}, {pipeline_mode = #tpu.pipeline_mode<synchronous>, transform_indices = @transform_2, window_bounds = array<i64: 1, 96>}, {transform_indices = @transform_3, window_bounds = array<i64: 1, 8, 32>}]} {
    %c0 = arith.constant 0 : index
    %c0_0 = arith.constant 0 : index
    %c0_1 = arith.constant 0 : index
    %0 = vector.load %arg1[%c0, %c0_0, %c0_1] : memref<1x8x32xf32, #tpu.memory_space<vmem>>, vector<1x8x32xf32>
    %1 = vector.shape_cast %0 : vector<1x8x32xf32> to vector<8x32xf32>
    %c0_2 = arith.constant 0 : index
    %c0_3 = arith.constant 0 : index
    %2 = vector.load %arg2[%c0_2, %c0_3] : memref<32x96xf32, #tpu.memory_space<vmem>>, vector<32x96xf32>
    %cst = arith.constant dense<0.000000e+00> : vector<8x96xf32>
    %3 = tpu.matmul %1, %2, %cst {dimension_numbers = #tpu.dot_dimension_numbers<[1], [0], [0], [1], [0, 0, 1, 1], [], []>} : vector<8x32xf32>, vector<32x96xf32>, vector<8x96xf32> -> vector<8x96xf32>
    %c0_4 = arith.constant 0 : index
    %c0_5 = arith.constant 0 : index
    %4 = vector.load %arg3[%c0_4, %c0_5] : memref<1x96xf32, #tpu.memory_space<vmem>>, vector<1x96xf32>
    %5 = vector.broadcast %4 : vector<1x96xf32> to vector<8x96xf32>
    %6 = arith.addf %3, %5 : vector<8x96xf32>
    %7 = vector.extract_strided_slice %6 {offsets = [0, 0], sizes = [8, 32], strides = [1, 1]} : vector<8x96xf32> to vector<8x32xf32>
    %8 = vector.shape_cast %7 : vector<8x32xf32> to vector<1x8x32xf32>
    %9 = vector.extract_strided_slice %6 {offsets = [0, 32], sizes = [8, 32], strides = [1, 1]} : vector<8x96xf32> to vector<8x32xf32>
    %10 = vector.shape_cast %9 : vector<8x32xf32> to vector<1x8x32xf32>
    %11 = vector.extract_strided_slice %6 {offsets = [0, 64], sizes = [8, 32], strides = [1, 1]} : vector<8x96xf32> to vector<8x32xf32>
    %12 = vector.shape_cast %11 : vector<8x32xf32> to vector<1x8x32xf32>
    "tpu.trace_start"() <{level = 10 : i32, message = "bnd,bmd->bnm"}> : () -> ()
    %cst_6 = arith.constant dense<0.000000e+00> : vector<1x8x8xf32>
    %13 = tpu.matmul %8, %10, %cst_6 {dimension_numbers = #tpu.dot_dimension_numbers<[2], [2], [1], [1], [0, 0, 0, 1, 1, 1], [0], [0]>} : vector<1x8x32xf32>, vector<1x8x32xf32>, vector<1x8x8xf32> -> vector<1x8x8xf32>
    "tpu.trace_stop"() : () -> ()
    %cst_7 = arith.constant 0.0220970865 : f32
    %14 = vector.broadcast %cst_7 : f32 to vector<1x8x8xf32>
    %15 = arith.mulf %13, %14 : vector<1x8x8xf32>
    %cst_8 = arith.constant dense<0xFF800000> : vector<1x8xf32>
    %16 = vector.multi_reduction <maximumf>, %15, %cst_8 [2] : vector<1x8x8xf32> to vector<1x8xf32>
    %17 = vector.shape_cast %16 : vector<1x8xf32> to vector<1x8x1xf32>
    %18 = vector.broadcast %17 : vector<1x8x1xf32> to vector<1x8x8xf32>
    %19 = arith.subf %15, %18 : vector<1x8x8xf32>
    %20 = math.exp %19 : vector<1x8x8xf32>
    %cst_9 = arith.constant dense<0.000000e+00> : vector<1x8xf32>
    %21 = vector.multi_reduction <add>, %20, %cst_9 [2] : vector<1x8x8xf32> to vector<1x8xf32>
    %22 = vector.shape_cast %21 : vector<1x8xf32> to vector<1x8x1xf32>
    %23 = tpu.reciprocal %22 : vector<1x8x1xf32> -> vector<1x8x1xf32>
    %24 = vector.broadcast %23 : vector<1x8x1xf32> to vector<1x8x8xf32>
    %25 = arith.mulf %20, %24 : vector<1x8x8xf32>
    "tpu.trace_start"() <{level = 10 : i32, message = "bnm,bmd->bnd"}> : () -> ()
    %cst_10 = arith.constant dense<0.000000e+00> : vector<1x8x32xf32>
    %26 = tpu.matmul %25, %12, %cst_10 {dimension_numbers = #tpu.dot_dimension_numbers<[2], [1], [1], [2], [0, 0, 0, 1, 1, 2], [0], [0]>} : vector<1x8x8xf32>, vector<1x8x32xf32>, vector<1x8x32xf32> -> vector<1x8x32xf32>
    "tpu.trace_stop"() : () -> ()
    %c0_11 = arith.constant 0 : index
    %c0_12 = arith.constant 0 : index
    %c0_13 = arith.constant 0 : index
    %27 = vector.load %arg4[%c0_11, %c0_12, %c0_13] : memref<1x8x32xf32, #tpu.memory_space<vmem>>, vector<1x8x32xf32>
    tpu.vector_store %arg4[%c0_11, %c0_12, %c0_13], %26 {strides = array<i32>} : memref<1x8x32xf32, #tpu.memory_space<vmem>>, vector<1x8x32xf32>,
    return
  }
  func.func @transform_0(%arg0: i32) -> (i32, i32, i32) {
    %c0_i32 = arith.constant 0 : i32
    %c0_i32_0 = arith.constant 0 : i32
    %c0_i32_1 = arith.constant 0 : i32
    return %arg0, %c0_i32, %c0_i32_0 : i32, i32, i32
  }
  func.func @transform_1(%arg0: i32) -> (i32, i32) {
    %c0_i32 = arith.constant 0 : i32
    %c0_i32_0 = arith.constant 0 : i32
    %c0_i32_1 = arith.constant 0 : i32
    return %c0_i32, %c0_i32_0 : i32, i32
  }
  func.func @transform_2(%arg0: i32) -> (i32, i32) {
    %c0_i32 = arith.constant 0 : i32
    %c0_i32_0 = arith.constant 0 : i32
    %c0_i32_1 = arith.constant 0 : i32
    return %c0_i32, %c0_i32_0 : i32, i32
  }
  func.func @transform_3(%arg0: i32) -> (i32, i32, i32) {
    %c0_i32 = arith.constant 0 : i32
    %c0_i32_0 = arith.constant 0 : i32
    %c0_i32_1 = arith.constant 0 : i32
    return %arg0, %c0_i32, %c0_i32_0 : i32, i32, i32
  }
}

</mosaic_0001>

<bundles_post_ra>
// kernel: tpu_custom_call.1
= control target key start
LH: loop header
LB: loop body
LE: loop exit
PB: predicated region body
PF: predicated region fallthrough
CT: control target
= control target key end

     0   :  { %8 = vsyncpa [#allocation3], 0  ;;  %s1000_s0 = inlined_call_operand.hbm [shape: f32[2,8,32], index: 0, kind: input, shape index: {}]   ;;  %s1001_s1 = inlined_call_operand.hbm [shape: f32[32,96], index: 1, kind: input, shape index: {}]   ;;  %s1002_s2 = inlined_call_operand.vmem [shape: f32[1,96], index: 2, kind: input, shape index: {}]   ;;  %s1003_s3 = inlined_call_operand.hbm [shape: f32[2,8,32], index: 3, kind: output, shape index: {}]  }
   0x1   :  { %10 = vsyncpa [#allocation3 + $0x1], 0 }
   0x2   :  { %11 = vsyncpa [#allocation6], 0 }
   0x3   :  { %12 = vsyncpa [#allocation4], 0 }
   0x4   :  { %14 = vsyncpa [#allocation4 + $0x1], 0  ;;  %s817_s12 = smov 0   ;;  %s819_s13 = smov 0  }
   0x5   :  { %s821_s14 = smov 0   ;;  %s823_s15 = smov 0  }
   0x6 LB: > { %s838_s16 = sadd.s32 4294967295, %s786_s15   ;;  %s548_s17 = sadd.s32 4294967294, %s786_s15   ;;  %s786_s15 = sphi %s823_s15, %s1025_s15   ;;  %s782_s14 = sphi %s821_s14, %s1024_s14   ;;  %s778_s13 = sphi %s819_s13, %s1023_s13   ;;  %s774_s12 = sphi %s817_s12, %s1022_s12  }
   0x7   : > { %p40_p0 = scmp.ne.s32.totalorder %s778_s13, %s774_s12  ;;  %p1004_p1 = scmp.eq.s32.totalorder %s838_s16, 0 }
   0x8   : > { %p112_p3 = scmp.eq.s32.totalorder %s548_s17, 1  ;;  %p549_p5 = scmp.ge.s32.totalorder %s786_s15, 1 }
   0x9   : > { %p847_p4 = por %p1004_p1, %p40_p0  ;;  %p119_p7 = scmp.lt.s32.totalorder %s786_s15, 3 }
   0xa   : > { %p852_p6 = por %p112_p3, %p40_p0  ;;  %s788_s21 = smov [#allocation5]  }
   0xb   : > { %s1008_s18 = scalar_select %p847_p4, 1, 0 }
   0xc   : > { %s1009_s19 = scalar_select %p852_p6, 1, 0 }
   0xd   : > { %p857_p8 = pnand %p549_p5, %p119_p7  ;;  %s131_s22 = sshll.u32 %s788_s21, 4  ;;  %s132_s22 = int_to_ptr.vmem [resolvable:$true] %s131_s22 }
   0xe   : > { %s871_s24 = sadd.s32 1, %s786_s15   ;;  %s27_s25 = sadd.s32 1, %s782_s14 }
   0xf   : > { %s1010_s20 = scalar_select %p857_p8, 1, 0 }
  0x10   : > { %p605_p9 = pneg %p857_p8  ;;  %s24_s26 = ssub.s32 %s786_s15, %s871_s24 }
  0x11   : > { %s675_s27 = scalar_lea.vmem %s132_s22, 512  ;;  %p683_p5 = scmp.lt.s32.totalorder %s132_s22, %s132_s22 }
  0x12   : > { %p866_p11 = pnand %p605_p9, %p1004_p1  ;;  %p676_p13 = scmp.ne.s32.totalorder %s132_s22, %s675_s27 }
  0x13   : > { %p684_p7 = scmp.lt.s32.totalorder %s675_s27, %s675_s27 }
  0x14   : > { %p666_p12 = pneg %p866_p11 }
  0x15   : > { %p685_p10 = por %p684_p7, %p683_p5 }
  0x16   : > { %p678_p0 = pnand %p676_p13, %p666_p12 }
  0x18   : > { %p679_p3 = pneg %p678_p0 }
  0x1a   : > { %p686_p2 = pnand %p685_p10, %p679_p3 }
  0x1c   : > { %689 = shalt.err (!%p686_p2)
}
  0x1d   : > { %s789_s28 = smov 128   ;;  %s790_s29 = smov 8  }
  0x1e   : > { %608 = dma.hbm_to_vmem [thread:$0]  (!%p866_p11), %s1001_s1, 512, %s132_s22, [#allocation6], %s789_s28, %s789_s28, %s790_s29  }
  0x1f   : > { %p25_p9 = scmp.eq.s32.totalorder %s24_s26, 0  ;;  %p34_p12 = scmp.ne.s32.totalorder %s782_s14, %s778_s13 }
  0x20   : > { %p35_p10 = scmp.eq.s32.totalorder %s786_s15, 0  ;;  %p618_p2 = scmp.lt.s32.totalorder %s786_s15, 2 }
  0x21   : > { %s888_s5 = scalar_select %p25_p9, %s782_s14, %s27_s25  }
  0x22   : > { %p36_p13 = por %p35_p10, %p34_p12  ;;  %p1012_p0 = scmp.eq.s32.totalorder %s838_s16, 1 }
  0x23   : > { %s148_s7 = sand.u32 1, %s782_s14   ;;  %s553_s8 = sshll.u32 %s786_s15, 7 }
  0x24   : > { %p892_p3 = por %p1012_p0, %p34_p12  ;;  %s552_s9 = sshll.u32 %s148_s7, 3 }
  0x25   : > { %s901_s17 = scalar_lea.hbm %s1000_s0, %s553_s8  ;;  %s152_s21 = scalar_lea.vmem [#allocation2], %s552_s9 }
  0x26   : > { %s1013_s6 = scalar_select %p892_p3, 1, 0 }
  0x27   : > { %s159_s22 = sshll.u32 %s152_s21, 4  ;;  %p903_p11 = pnand %p618_p2, %p36_p13  ;;  %s160_s22 = int_to_ptr.vmem [resolvable:$true] %s159_s22 }
  0x28   : > { %s149_s25 = scalar_lea.sflag [#allocation3], %s148_s7  ;;  %s690_s26 = scalar_lea.hbm %s901_s17, 128 }
  0x29   : > { %p691_p5 = scmp.ne.s32.totalorder %s901_s17, %s690_s26  ;;  %p692_p7 = pneg %p903_p11 }
  0x2a   : > { %s695_s29 = scalar_lea.hbm %s1000_s0, 256  ;;  %p696_p10 = scmp.lt.s32.totalorder %s901_s17, %s1000_s0 }
  0x2b   : > { %p693_p9 = pnand %p692_p7, %p691_p5  ;;  %p697_p2 = scmp.lt.s32.totalorder %s695_s29, %s690_s26 }
  0x2d   : > { %p694_p12 = pneg %p693_p9  ;;  %p698_p13 = por %p697_p2, %p696_p10 }
  0x2f   : > { %p699_p0 = pnand %p698_p13, %p694_p12 }
  0x31   : > { %702 = shalt.err (!%p699_p0)
}
  0x32   : > { %s703_s8 = scalar_lea.vmem %s160_s22, 128  ;;  %s791_s7 = smov [#allocation2]  }
  0x33   : > { %p704_p1 = scmp.ne.s32.totalorder %s160_s22, %s703_s8  ;;  %s708_s9 = sshll.u32 %s791_s7, 4  ;;  %s709_s9 = int_to_ptr.vmem [resolvable:$false] %s708_s9 }
  0x34   : > { %s710_s10 = scalar_lea.vmem %s709_s9, 256  ;;  %p711_p5 = scmp.lt.s32.totalorder %s160_s22, %s709_s9 }
  0x35   : > { %p706_p6 = pnand %p704_p1, %p692_p7  ;;  %p712_p9 = scmp.lt.s32.totalorder %s710_s10, %s703_s8 }
  0x37   : > { %p707_p3 = pneg %p706_p6  ;;  %p713_p4 = por %p712_p9, %p711_p5 }
  0x39   : > { %p714_p8 = pnand %p713_p4, %p707_p3 }
  0x3b   : > { %717 = shalt.err (!%p714_p8)
}
  0x3c   : > { %612 = dma.hbm_to_vmem [thread:$0]  (!%p903_p11), %s901_s17, 128, %s160_s22, %s149_s25  }
  0x3d   : > { %p1015_p12 = scmp.ne.s32.totalorder %s1010_s20, 0 }
  0x3e   : > { %s924_s11 = sand.u32 (!%p1015_p12), 1, %s778_s13   ;;  %p1016_p1 = scmp.ne.s32.totalorder (!%p1015_p12), %s1008_s18, 0 }
  0x3f   : > { %168 = sbr.rel (%p1015_p12) target bundleno = 1109 (0x455), region = 32  ;;  %s555_s21 = sshll.u32 (!%p1015_p12), %s924_s11, 3 }
  0x40   : > { %s171_s26 = scalar_lea.sflag (!%p1015_p12), [#allocation3], %s924_s11  ;;  %s174_s27 = scalar_lea.vmem (!%p1015_p12), [#allocation2], %s555_s21 }
  0x44   : > { %761 = dma.done.wait (%p1016_p1), %s171_s26, 128  }
  0x45   : > { %763 = vsyncadd (%p1016_p1), %s171_s26, 4294967168  ;;  %p1017_p4 = scmp.eq.s32.totalorder %s838_s16, 0 }
  0x47   : > { %765 = dma.done.wait (%p1017_p4), [#allocation6], 512   ;;  %p1018_p6 = pmov %p1017_p4 }
  0x48   : > { %v792_v0 = vmov 0.0   ;;  %vm793_vm0 = vmmov 0   ;;  %v205_v1 = vld [vmem:[#allocation5 + $0x18] sm:$0xff]  ;;  %v204_v2 = vld [vmem:[#allocation5 + $0x10] sm:$0xff]  ;;  %v203_v3 = vld [vmem:[#allocation5 + $0x8] sm:$0xff]  ;;  %vm213_vm1 = vcmask 261120  }
  0x49   : > { %767 = vsyncadd (%p1018_p6), [#allocation6], 4294966784  ;;  %576 = vmatprep.subr.mxu0 %v792_v0  ;;  %584 = vmatprep.mubr.msk.f32.mxu0 %vm793_vm0, %v792_v0  ;;  %v202_v4 = vld [vmem:[#allocation5] sm:$0xff]  ;;  %v201_v5 = vld [vmem:[%s174_s27] sm:$0xff]  ;;  %s794_s17 = smov 96   ;;  %vm365_vm2 = vcmask 64512  }
  0x4a   : > { %587 = vmatprep.subr.mxu1 %v792_v0  ;;  %589 = vmatprep.mubr.msk.f32.mxu1 %vm793_vm0, %v792_v0  ;;  %v558_v6 = vld [vmem:[%s1002_s2] ss:$0 sm:$0xff]  ;;  %s795_s22 = smov 64   ;;  %s564_s23 = sshll.u32 %s838_s16, 7 }
  0x4b   : > { %577 = vmatpush3.msra.mxu0 %v205_v1  ;;  %s200_s25 = scalar_lea.vmem [#allocation7], %s555_s21  ;;  %s956_s4 = scalar_lea.hbm %s1003_s3, %s564_s23 }
  0x4c   : > { %578 = vmatprep.subr.mxu0 %v792_v0  ;;  %s468_s28 = sshll.u32 %s200_s25, 4  ;;  %s455_s8 = scalar_lea.sflag [#allocation4], %s924_s11  ;;  %s958_s28 = int_to_ptr.vmem [resolvable:$true] %s468_s28 }
  0x4d   : > { %579 = vmatpush3.msra.mxu0 %v204_v2  ;;  %s718_s7 = scalar_lea.vmem %s958_s28, 128  ;;  %p1019_p3 = scmp.ne.s32.totalorder %s1013_s6, 0 }
  0x4e   : > { %580 = vmatprep.subr.mxu0 %v792_v0  ;;  %p719_p8 = scmp.ne.s32.totalorder %s958_s28, %s718_s7  ;;  %s796_s16 = smov [#allocation7]  }
  0x4f   : > { %581 = vmatpush3.msra.mxu0 %v203_v3  ;;  %s722_s9 = sshll.u32 %s796_s16, 4  ;;  %s723_s9 = int_to_ptr.vmem [resolvable:$false] %s722_s9 }
  0x50   : > { %582 = vmatprep.subr.mxu0 %v792_v0  ;;  %p720_p11 = pnand %p719_p8, %p1019_p3  ;;  %s724_s10 = scalar_lea.vmem %s723_s9, 256 }
  0x51   : > { %583 = vmatpush3.msra.mxu0 %v202_v4  ;;  %p725_p10 = scmp.lt.s32.totalorder %s958_s28, %s723_s9  ;;  %p726_p2 = scmp.lt.s32.totalorder %s724_s10, %s718_s7 }
  0x52   : > { %585 = vmatmul.mubr.msk.f32.vlgmr.msra.gmra.mxu0 %vm213_vm1, %v201_v5  ;;  %p721_p7 = pneg %p720_p11 }
  0x53   : > { %p727_p13 = por %p726_p2, %p725_p10 }
  0x55   : > { %p728_p0 = pnand %p727_p13, %p721_p7 }
 0x112   : > { %v283_v7 = vpop.f32.mrf.mxu0 }
 0x113   : > { %v284_v8 = vadd.f32 %v558_v6, %v283_v7 }
 0x114   : > { %v586_v9 = vpop.f32.mrf.mxu0 }
 0x115   : > { %288 = vrot.lane.b32.xlu0 %v284_v8, %s794_s17 }
 0x187   : > { %v289_v10 = vpop.permute.xlu0 %288 }
 0x188   : > { %588 = vmatpush3.xpose.msk.msra.mxu1 %vm213_vm1, %v289_v10 }
 0x189   : > { %592 = vmatprep.subr.mxu1 %v792_v0 }
 0x18b   : > { %590 = vmatmul.mubr.msk.f32.vlgmr.msra.gmra.mxu1 %vm213_vm1, %v284_v8 }
 0x18c   : > { %594 = vmatprep.mubr.msk.f32.mxu1 %vm793_vm0, %v792_v0 }
 0x24b   : > { %v360_v11 = vpop.f32.mrf.mxu1 }
 0x24c   : > { %v364_v12 = vmul.f32 0.022097087, %v360_v11 }
 0x24d   : > { %v591_v13 = vpop.f32.mrf.mxu1 }
 0x24e   : > { %v366_v14 = vsel %vm365_vm2, %v364_v12, -inf }
 0x24f   : > { %367 = vmax.xlane.f32.xlu0 %v366_v14 }
 0x2d8   : > { %v368_v15 = vpop.xlane.xlu0 %367 }
 0x2d9   : > { %v369_v16 = vsub.f32 %v364_v12, %v368_v15 }
 0x2db   : > { %v370_v17 = vmul.f32 1.442695, %v369_v16 }
 0x2dd   : > { %660 = vpow2.f32 %v370_v17 }
 0x2ea   : > { %v661_v18 = vpop.eup %660 }
 0x2eb   : > { %v372_v19 = vsel %vm365_vm2, %v661_v18, 0.0 }
 0x2ec   : > { %373 = vadd.xlane.f32.xlu1 %v372_v19 }
 0x2fd   : > { %377 = vrot.lane.b32.xlu1 %v284_v8, %s795_s22 }
 0x375   : > { %v374_v20 = vpop.xlane.xlu1 %373 }
 0x376   : > { %662 = vrcp.f32 %v374_v20 }
 0x379   : > { %v378_v21 = vpop.permute.xlu1 %377 }
 0x37a   : > { %593 = vmatpush3.msra.mxu1 %v378_v21 }
 0x383   : > { %v663_v22 = vpop.eup %662 }
 0x384   : > { %v376_v23 = vmul.f32 %v663_v22, %v661_v18 }
 0x386   : > { %595 = vmatmul.mubr.msk.f32.vlgmr.msra.gmra.mxu1 %vm365_vm2, %v376_v23 }
 0x446   : > { %v449_v24 = vpop.f32.mrf.mxu1 }
 0x447   : > { %453 = vst.msk [vmem:[%s200_s25] sm:$0xff] %vm213_vm1, %v449_v24 }
 0x448   : > { %v596_v25 = vpop.f32.mrf.mxu1 }
 0x449   : > { %731 = shalt.err (!%p728_p0)
}
 0x44a   : > { %s732_s21 = scalar_lea.hbm %s956_s4, 128  ;;  %s736_s27 = scalar_lea.hbm %s1003_s3, 256 }
 0x44b   : > { %p733_p5 = scmp.ne.s32.totalorder %s956_s4, %s732_s21  ;;  %p737_p1 = scmp.lt.s32.totalorder %s956_s4, %s1003_s3 }
 0x44c   : > { %p738_p4 = scmp.lt.s32.totalorder %s736_s27, %s732_s21 }
 0x44d   : > { %p734_p9 = pnand %p733_p5, %p1019_p3 }
 0x44e   : > { %p739_p6 = por %p738_p4, %p737_p1 }
 0x44f   : > { %p735_p12 = pneg %p734_p9 }
 0x451   : > { %p740_p8 = pnand %p739_p6, %p735_p12 }
 0x453   : > { %743 = shalt.err (!%p740_p8)
}
 0x454   : > { %603 = dma.vmem_to_hbm [thread:$0]  (%p1019_p3), %s958_s28, 128, %s956_s4, %s455_s8  }
 0x455 PF: > { %s480_s17 = sand.u32 1, %s774_s12   ;;  %p1020_p11 = scmp.ne.s32.totalorder %s1009_s19, 0 }
 0x456   : > { %p1021_p7 = scmp.ge.s32.totalorder %s786_s15, 2  ;;  %s481_s22 = scalar_lea.sflag [#allocation4], %s480_s17 }
 0x458   : > { %p614_p10 = pnand %p1021_p7, %p1020_p11 }
 0x45a   : > { %p615_p2 = pneg %p614_p10 }
 0x45c   : > { %769 = dma.done.wait (%p615_p2), %s481_s22, 128  }
 0x45d   : > { %771 = vsyncadd (%p615_p2), %s481_s22, 4294967168  ;;  %p17_p13 = scmp.ge.s32.totalorder %s871_s24, 4   ;;  %s1022_s12 = smov %s778_s13 }
 0x45e   : > { %s1023_s13 = smov %s782_s14  ;;  %s1024_s14 = smov %s888_s5 }
 0x45f   : > { %s1025_s15 = smov %s871_s24  ;;  %19 = sbr.rel (!%p17_p13) target bundleno = 6 (0x6), region = 81 }
 0x464   :  { %486 = vsyncpa [#allocation3], 1 }
 0x465   :  { %488 = vsyncpa [#allocation3 + $0x1], 1 }
 0x466   :  { %489 = vsyncpa [#allocation6], 1 }
 0x467   :  { %490 = vsyncpa [#allocation4], 1 }
 0x468   :  { %492 = vsyncpa [#allocation4 + $0x1], 1 }

// kernel: tpu_custom_call.1
= control target key start
LH: loop header
LB: loop body
LE: loop exit
PB: predicated region body
PF: predicated region fallthrough
CT: control target
= control target key end

     0   :  { %8 = vsyncpa [#allocation3], 0  ;;  %s1000_s0 = inlined_call_operand.hbm [shape: f32[2,8,32], index: 0, kind: input, shape index: {}]   ;;  %s1001_s1 = inlined_call_operand.hbm [shape: f32[32,96], index: 1, kind: input, shape index: {}]   ;;  %s1002_s2 = inlined_call_operand.vmem [shape: f32[1,96], index: 2, kind: input, shape index: {}]   ;;  %s1003_s3 = inlined_call_operand.hbm [shape: f32[2,8,32], index: 3, kind: output, shape index: {}]  }
   0x1   :  { %10 = vsyncpa [#allocation3 + $0x1], 0 }
   0x2   :  { %11 = vsyncpa [#allocation6], 0 }
   0x3   :  { %12 = vsyncpa [#allocation4], 0 }
   0x4   :  { %14 = vsyncpa [#allocation4 + $0x1], 0  ;;  %s817_s12 = smov 0   ;;  %s819_s13 = smov 0  }
   0x5   :  { %s821_s14 = smov 0   ;;  %s823_s15 = smov 0  }
   0x6 LB: > { %s838_s16 = sadd.s32 4294967295, %s786_s15   ;;  %s548_s17 = sadd.s32 4294967294, %s786_s15   ;;  %s786_s15 = sphi %s823_s15, %s1025_s15   ;;  %s782_s14 = sphi %s821_s14, %s1024_s14   ;;  %s778_s13 = sphi %s819_s13, %s1023_s13   ;;  %s774_s12 = sphi %s817_s12, %s1022_s12  }
   0x7   : > { %p40_p0 = scmp.ne.s32.totalorder %s778_s13, %s774_s12  ;;  %p1004_p1 = scmp.eq.s32.totalorder %s838_s16, 0 }
   0x8   : > { %p112_p3 = scmp.eq.s32.totalorder %s548_s17, 1  ;;  %p549_p5 = scmp.ge.s32.totalorder %s786_s15, 1 }
   0x9   : > { %p847_p4 = por %p1004_p1, %p40_p0  ;;  %p119_p7 = scmp.lt.s32.totalorder %s786_s15, 3 }
   0xa   : > { %p852_p6 = por %p112_p3, %p40_p0  ;;  %s788_s21 = smov [#allocation5]  }
   0xb   : > { %s1008_s18 = scalar_select %p847_p4, 1, 0 }
   0xc   : > { %s1009_s19 = scalar_select %p852_p6, 1, 0 }
   0xd   : > { %p857_p8 = pnand %p549_p5, %p119_p7  ;;  %s131_s22 = sshll.u32 %s788_s21, 4  ;;  %s132_s22 = int_to_ptr.vmem [resolvable:$true] %s131_s22 }
   0xe   : > { %s871_s24 = sadd.s32 1, %s786_s15   ;;  %s27_s25 = sadd.s32 1, %s782_s14 }
   0xf   : > { %s1010_s20 = scalar_select %p857_p8, 1, 0 }
  0x10   : > { %p605_p9 = pneg %p857_p8  ;;  %s24_s26 = ssub.s32 %s786_s15, %s871_s24 }
  0x11   : > { %s675_s27 = scalar_lea.vmem %s132_s22, 512  ;;  %p683_p5 = scmp.lt.s32.totalorder %s132_s22, %s132_s22 }
  0x12   : > { %p866_p11 = pnand %p605_p9, %p1004_p1  ;;  %p676_p13 = scmp.ne.s32.totalorder %s132_s22, %s675_s27 }
  0x13   : > { %p684_p7 = scmp.lt.s32.totalorder %s675_s27, %s675_s27 }
  0x14   : > { %p666_p12 = pneg %p866_p11 }
  0x15   : > { %p685_p10 = por %p684_p7, %p683_p5 }
  0x16   : > { %p678_p0 = pnand %p676_p13, %p666_p12 }
  0x18   : > { %p679_p3 = pneg %p678_p0 }
  0x1a   : > { %p686_p2 = pnand %p685_p10, %p679_p3 }
  0x1c   : > { %689 = shalt.err (!%p686_p2)
}
  0x1d   : > { %s789_s28 = smov 128   ;;  %s790_s29 = smov 8  }
  0x1e   : > { %608 = dma.hbm_to_vmem [thread:$0]  (!%p866_p11), %s1001_s1, 512, %s132_s22, [#allocation6], %s789_s28, %s789_s28, %s790_s29  }
  0x1f   : > { %p25_p9 = scmp.eq.s32.totalorder %s24_s26, 0  ;;  %p34_p12 = scmp.ne.s32.totalorder %s782_s14, %s778_s13 }
  0x20   : > { %p35_p10 = scmp.eq.s32.totalorder %s786_s15, 0  ;;  %p618_p2 = scmp.lt.s32.totalorder %s786_s15, 2 }
  0x21   : > { %s888_s5 = scalar_select %p25_p9, %s782_s14, %s27_s25  }
  0x22   : > { %p36_p13 = por %p35_p10, %p34_p12  ;;  %p1012_p0 = scmp.eq.s32.totalorder %s838_s16, 1 }
  0x23   : > { %s148_s7 = sand.u32 1, %s782_s14   ;;  %s553_s8 = sshll.u32 %s786_s15, 7 }
  0x24   : > { %p892_p3 = por %p1012_p0, %p34_p12  ;;  %s552_s9 = sshll.u32 %s148_s7, 3 }
  0x25   : > { %s901_s17 = scalar_lea.hbm %s1000_s0, %s553_s8  ;;  %s152_s21 = scalar_lea.vmem [#allocation2], %s552_s9 }
  0x26   : > { %s1013_s6 = scalar_select %p892_p3, 1, 0 }
  0x27   : > { %s159_s22 = sshll.u32 %s152_s21, 4  ;;  %p903_p11 = pnand %p618_p2, %p36_p13  ;;  %s160_s22 = int_to_ptr.vmem [resolvable:$true] %s159_s22 }
  0x28   : > { %s149_s25 = scalar_lea.sflag [#allocation3], %s148_s7  ;;  %s690_s26 = scalar_lea.hbm %s901_s17, 128 }
  0x29   : > { %p691_p5 = scmp.ne.s32.totalorder %s901_s17, %s690_s26  ;;  %p692_p7 = pneg %p903_p11 }
  0x2a   : > { %s695_s29 = scalar_lea.hbm %s1000_s0, 256  ;;  %p696_p10 = scmp.lt.s32.totalorder %s901_s17, %s1000_s0 }
  0x2b   : > { %p693_p9 = pnand %p692_p7, %p691_p5  ;;  %p697_p2 = scmp.lt.s32.totalorder %s695_s29, %s690_s26 }
  0x2d   : > { %p694_p12 = pneg %p693_p9  ;;  %p698_p13 = por %p697_p2, %p696_p10 }
  0x2f   : > { %p699_p0 = pnand %p698_p13, %p694_p12 }
  0x31   : > { %702 = shalt.err (!%p699_p0)
}
  0x32   : > { %s703_s8 = scalar_lea.vmem %s160_s22, 128  ;;  %s791_s7 = smov [#allocation2]  }
  0x33   : > { %p704_p1 = scmp.ne.s32.totalorder %s160_s22, %s703_s8  ;;  %s708_s9 = sshll.u32 %s791_s7, 4  ;;  %s709_s9 = int_to_ptr.vmem [resolvable:$false] %s708_s9 }
  0x34   : > { %s710_s10 = scalar_lea.vmem %s709_s9, 256  ;;  %p711_p5 = scmp.lt.s32.totalorder %s160_s22, %s709_s9 }
  0x35   : > { %p706_p6 = pnand %p704_p1, %p692_p7  ;;  %p712_p9 = scmp.lt.s32.totalorder %s710_s10, %s703_s8 }
  0x37   : > { %p707_p3 = pneg %p706_p6  ;;  %p713_p4 = por %p712_p9, %p711_p5 }
  0x39   : > { %p714_p8 = pnand %p713_p4, %p707_p3 }
  0x3b   : > { %717 = shalt.err (!%p714_p8)
}
  0x3c   : > { %612 = dma.hbm_to_vmem [thread:$0]  (!%p903_p11), %s901_s17, 128, %s160_s22, %s149_s25  }
  0x3d   : > { %p1015_p12 = scmp.ne.s32.totalorder %s1010_s20, 0 }
  0x3e   : > { %s924_s11 = sand.u32 (!%p1015_p12), 1, %s778_s13   ;;  %p1016_p1 = scmp.ne.s32.totalorder (!%p1015_p12), %s1008_s18, 0 }
  0x3f   : > { %168 = sbr.rel (%p1015_p12) target bundleno = 1109 (0x455), region = 32  ;;  %s555_s21 = sshll.u32 (!%p1015_p12), %s924_s11, 3 }
  0x40   : > { %s171_s26 = scalar_lea.sflag (!%p1015_p12), [#allocation3], %s924_s11  ;;  %s174_s27 = scalar_lea.vmem (!%p1015_p12), [#allocation2], %s555_s21 }
  0x44   : > { %761 = dma.done.wait (%p1016_p1), %s171_s26, 128  }
  0x45   : > { %763 = vsyncadd (%p1016_p1), %s171_s26, 4294967168  ;;  %p1017_p4 = scmp.eq.s32.totalorder %s838_s16, 0 }
  0x47   : > { %765 = dma.done.wait (%p1017_p4), [#allocation6], 512   ;;  %p1018_p6 = pmov %p1017_p4 }
  0x48   : > { %v792_v0 = vmov 0.0   ;;  %vm793_vm0 = vmmov 0   ;;  %v205_v1 = vld [vmem:[#allocation5 + $0x18] sm:$0xff]  ;;  %v204_v2 = vld [vmem:[#allocation5 + $0x10] sm:$0xff]  ;;  %v203_v3 = vld [vmem:[#allocation5 + $0x8] sm:$0xff]  ;;  %vm213_vm1 = vcmask 261120  }
  0x49   : > { %767 = vsyncadd (%p1018_p6), [#allocation6], 4294966784  ;;  %576 = vmatprep.subr.mxu0 %v792_v0  ;;  %584 = vmatprep.mubr.msk.f32.mxu0 %vm793_vm0, %v792_v0  ;;  %v202_v4 = vld [vmem:[#allocation5] sm:$0xff]  ;;  %v201_v5 = vld [vmem:[%s174_s27] sm:$0xff]  ;;  %s794_s17 = smov 96   ;;  %vm365_vm2 = vcmask 64512  }
  0x4a   : > { %587 = vmatprep.subr.mxu1 %v792_v0  ;;  %589 = vmatprep.mubr.msk.f32.mxu1 %vm793_vm0, %v792_v0  ;;  %v558_v6 = vld [vmem:[%s1002_s2] ss:$0 sm:$0xff]  ;;  %s795_s22 = smov 64   ;;  %s564_s23 = sshll.u32 %s838_s16, 7 }
  0x4b   : > { %577 = vmatpush3.msra.mxu0 %v205_v1  ;;  %s200_s25 = scalar_lea.vmem [#allocation7], %s555_s21  ;;  %s956_s4 = scalar_lea.hbm %s1003_s3, %s564_s23 }
  0x4c   : > { %578 = vmatprep.subr.mxu0 %v792_v0  ;;  %s468_s28 = sshll.u32 %s200_s25, 4  ;;  %s455_s8 = scalar_lea.sflag [#allocation4], %s924_s11  ;;  %s958_s28 = int_to_ptr.vmem [resolvable:$true] %s468_s28 }
  0x4d   : > { %579 = vmatpush3.msra.mxu0 %v204_v2  ;;  %s718_s7 = scalar_lea.vmem %s958_s28, 128  ;;  %p1019_p3 = scmp.ne.s32.totalorder %s1013_s6, 0 }
  0x4e   : > { %580 = vmatprep.subr.mxu0 %v792_v0  ;;  %p719_p8 = scmp.ne.s32.totalorder %s958_s28, %s718_s7  ;;  %s796_s16 = smov [#allocation7]  }
  0x4f   : > { %581 = vmatpush3.msra.mxu0 %v203_v3  ;;  %s722_s9 = sshll.u32 %s796_s16, 4  ;;  %s723_s9 = int_to_ptr.vmem [resolvable:$false] %s722_s9 }
  0x50   : > { %582 = vmatprep.subr.mxu0 %v792_v0  ;;  %p720_p11 = pnand %p719_p8, %p1019_p3  ;;  %s724_s10 = scalar_lea.vmem %s723_s9, 256 }
  0x51   : > { %583 = vmatpush3.msra.mxu0 %v202_v4  ;;  %p725_p10 = scmp.lt.s32.totalorder %s958_s28, %s723_s9  ;;  %p726_p2 = scmp.lt.s32.totalorder %s724_s10, %s718_s7 }
  0x52   : > { %585 = vmatmul.mubr.msk.f32.vlgmr.msra.gmra.mxu0 %vm213_vm1, %v201_v5  ;;  %p721_p7 = pneg %p720_p11 }
  0x53   : > { %p727_p13 = por %p726_p2, %p725_p10 }
  0x55   : > { %p728_p0 = pnand %p727_p13, %p721_p7 }
 0x112   : > { %v283_v7 = vpop.f32.mrf.mxu0 }
 0x113   : > { %v284_v8 = vadd.f32 %v558_v6, %v283_v7 }
 0x114   : > { %v586_v9 = vpop.f32.mrf.mxu0 }
 0x115   : > { %288 = vrot.lane.b32.xlu0 %v284_v8, %s794_s17 }
 0x187   : > { %v289_v10 = vpop.permute.xlu0 %288 }
 0x188   : > { %588 = vmatpush3.xpose.msk.msra.mxu1 %vm213_vm1, %v289_v10 }
 0x189   : > { %592 = vmatprep.subr.mxu1 %v792_v0 }
 0x18b   : > { %590 = vmatmul.mubr.msk.f32.vlgmr.msra.gmra.mxu1 %vm213_vm1, %v284_v8 }
 0x18c   : > { %594 = vmatprep.mubr.msk.f32.mxu1 %vm793_vm0, %v792_v0 }
 0x24b   : > { %v360_v11 = vpop.f32.mrf.mxu1 }
 0x24c   : > { %v364_v12 = vmul.f32 0.022097087, %v360_v11 }
 0x24d   : > { %v591_v13 = vpop.f32.mrf.mxu1 }
 0x24e   : > { %v366_v14 = vsel %vm365_vm2, %v364_v12, -inf }
 0x24f   : > { %367 = vmax.xlane.f32.xlu0 %v366_v14 }
 0x2d8   : > { %v368_v15 = vpop.xlane.xlu0 %367 }
 0x2d9   : > { %v369_v16 = vsub.f32 %v364_v12, %v368_v15 }
 0x2db   : > { %v370_v17 = vmul.f32 1.442695, %v369_v16 }
 0x2dd   : > { %660 = vpow2.f32 %v370_v17 }
 0x2ea   : > { %v661_v18 = vpop.eup %660 }
 0x2eb   : > { %v372_v19 = vsel %vm365_vm2, %v661_v18, 0.0 }
 0x2ec   : > { %373 = vadd.xlane.f32.xlu1 %v372_v19 }
 0x2fd   : > { %377 = vrot.lane.b32.xlu1 %v284_v8, %s795_s22 }
 0x375   : > { %v374_v20 = vpop.xlane.xlu1 %373 }
 0x376   : > { %662 = vrcp.f32 %v374_v20 }
 0x379   : > { %v378_v21 = vpop.permute.xlu1 %377 }
 0x37a   : > { %593 = vmatpush3.msra.mxu1 %v378_v21 }
 0x383   : > { %v663_v22 = vpop.eup %662 }
 0x384   : > { %v376_v23 = vmul.f32 %v663_v22, %v661_v18 }
 0x386   : > { %595 = vmatmul.mubr.msk.f32.vlgmr.msra.gmra.mxu1 %vm365_vm2, %v376_v23 }
 0x446   : > { %v449_v24 = vpop.f32.mrf.mxu1 }
 0x447   : > { %453 = vst.msk [vmem:[%s200_s25] sm:$0xff] %vm213_vm1, %v449_v24 }
 0x448   : > { %v596_v25 = vpop.f32.mrf.mxu1 }
 0x449   : > { %731 = shalt.err (!%p728_p0)
}
 0x44a   : > { %s732_s21 = scalar_lea.hbm %s956_s4, 128  ;;  %s736_s27 = scalar_lea.hbm %s1003_s3, 256 }
 0x44b   : > { %p733_p5 = scmp.ne.s32.totalorder %s956_s4, %s732_s21  ;;  %p737_p1 = scmp.lt.s32.totalorder %s956_s4, %s1003_s3 }
 0x44c   : > { %p738_p4 = scmp.lt.s32.totalorder %s736_s27, %s732_s21 }
 0x44d   : > { %p734_p9 = pnand %p733_p5, %p1019_p3 }
 0x44e   : > { %p739_p6 = por %p738_p4, %p737_p1 }
 0x44f   : > { %p735_p12 = pneg %p734_p9 }
 0x451   : > { %p740_p8 = pnand %p739_p6, %p735_p12 }
 0x453   : > { %743 = shalt.err (!%p740_p8)
}
 0x454   : > { %603 = dma.vmem_to_hbm [thread:$0]  (%p1019_p3), %s958_s28, 128, %s956_s4, %s455_s8  }
 0x455 PF: > { %s480_s17 = sand.u32 1, %s774_s12   ;;  %p1020_p11 = scmp.ne.s32.totalorder %s1009_s19, 0 }
 0x456   : > { %p1021_p7 = scmp.ge.s32.totalorder %s786_s15, 2  ;;  %s481_s22 = scalar_lea.sflag [#allocation4], %s480_s17 }
 0x458   : > { %p614_p10 = pnand %p1021_p7, %p1020_p11 }
 0x45a   : > { %p615_p2 = pneg %p614_p10 }
 0x45c   : > { %769 = dma.done.wait (%p615_p2), %s481_s22, 128  }
 0x45d   : > { %771 = vsyncadd (%p615_p2), %s481_s22, 4294967168  ;;  %p17_p13 = scmp.ge.s32.totalorder %s871_s24, 4   ;;  %s1022_s12 = smov %s778_s13 }
 0x45e   : > { %s1023_s13 = smov %s782_s14  ;;  %s1024_s14 = smov %s888_s5 }
 0x45f   : > { %s1025_s15 = smov %s871_s24  ;;  %19 = sbr.rel (!%p17_p13) target bundleno = 6 (0x6), region = 81 }
 0x464   :  { %486 = vsyncpa [#allocation3], 1 }
 0x465   :  { %488 = vsyncpa [#allocation3 + $0x1], 1 }
 0x466   :  { %489 = vsyncpa [#allocation6], 1 }
 0x467   :  { %490 = vsyncpa [#allocation4], 1 }
 0x468   :  { %492 = vsyncpa [#allocation4 + $0x1], 1 }

</bundles_post_ra>
